<compile_context>
chip_gen: v7x
topology: tpu7x:2x2x1
jax: 0.10.0
libtpu: 0.0.40
codegen_flags: <defaults>
</compile_context>

<pallas_src>
import functools
import math

import jax
import jax.numpy as jnp
from jax import lax
from jax.experimental import pallas as pl
from jax.experimental.pallas import tpu as pltpu


# 48 MiB: above the scoped defaults (16 MiB v5e / 32 MiB v6e,v7x), below the
# physical VMEM on every generation (128 / 128 / 64 MiB).
_VMEM_LIMIT_BYTES = 48 * 1024 * 1024


def _compiler_params(num_grid_axes=1):
    return pltpu.CompilerParams(
        dimension_semantics=("parallel",) * num_grid_axes,
        vmem_limit_bytes=_VMEM_LIMIT_BYTES)


def _row_tile(m):
    """Largest power-of-two row tile <= 512 dividing m, keeping >= 2 grid steps
    when possible so both v7x TensorCores get work."""
    for t in (512, 256, 128, 64, 32, 16, 8):
        if m % t == 0 and m // t >= 2:
            return t
    return m  # small m (or odd m after padding never happens): single block


def _pad_rows(x, multiple=8):
    m = x.shape[0]
    pad = (-m) % multiple
    if pad:
        x = jnp.pad(x, ((0, pad), (0, 0)))
    return x, pad


# ----------------------------------------------------------------------------
# Pallas kernels
# ----------------------------------------------------------------------------
def _dense_kernel(x_ref, w_ref, b_ref, o_ref, *, activation):
    # bf16 MXU inputs, f32 accumulation.
    x = x_ref[...].astype(jnp.bfloat16)
    y = jnp.dot(x, w_ref[...], preferred_element_type=jnp.float32) + b_ref[...]
    if activation == "relu":
        y = jnp.maximum(y, 0.0)
    elif activation == "gelu":
        y = 0.5 * y * (1.0 + lax.erf(y * (1.0 / math.sqrt(2.0))))
    o_ref[...] = y.astype(o_ref.dtype)


def dense(x, w, b, activation="none"):
    """x: (M, K) f32, w: (K, N) bf16, b: (1, N) f32 -> (M, N) f32."""
    m0 = x.shape[0]
    x, pad = _pad_rows(x)
    M, K = x.shape
    N = w.shape[1]
    tm = _row_tile(M)
    out = pl.pallas_call(
        functools.partial(_dense_kernel, activation=activation),
        out_shape=jax.ShapeDtypeStruct((M, N), jnp.float32),
        grid=(M // tm,),
        in_specs=[
            pl.BlockSpec((tm, K), lambda i: (i, 0)),
            # TODO(synk): N-tile the weight (512-1024 cols) for BERT-size layers on v7x.
            pl.BlockSpec((K, N), lambda i: (0, 0)),
            pl.BlockSpec((1, N), lambda i: (0, 0)),
        ],
        out_specs=pl.BlockSpec((tm, N), lambda i: (i, 0)),
        compiler_params=_compiler_params(),
    )(x, w, b)
    return out[:m0] if pad else out


def _dense_res_ln_kernel(x_ref, w_ref, b_ref, r_ref, g_ref, lb_ref, o_ref, *, eps):
    # Fused: y = x @ W + b ; z = residual + y ; out = LayerNorm(z) * g + lb
    x = x_ref[...].astype(jnp.bfloat16)
    y = jnp.dot(x, w_ref[...], preferred_element_type=jnp.float32)
    z = y + b_ref[...] + r_ref[...]
    mu = jnp.mean(z, axis=-1, keepdims=True)
    var = jnp.mean(jnp.square(z - mu), axis=-1, keepdims=True)
    o_ref[...] = ((z - mu) * lax.rsqrt(var + eps) * g_ref[...]
                  + lb_ref[...]).astype(o_ref.dtype)


def dense_res_ln(x, w, b, res, g, lb, eps=1e-12):
    """LayerNorm(res + (x @ w + b)); x:(M,K) f32, w:(K,N) bf16, res:(M,N) f32."""
    m0 = x.shape[0]
    x, pad = _pad_rows(x)
    res, _ = _pad_rows(res)
    M, K = x.shape
    N = w.shape[1]
    tm = _row_tile(M)
    out = pl.pallas_call(
        functools.partial(_dense_res_ln_kernel, eps=eps),
        out_shape=jax.ShapeDtypeStruct((M, N), jnp.float32),
        grid=(M // tm,),
        in_specs=[
            pl.BlockSpec((tm, K), lambda i: (i, 0)),
            pl.BlockSpec((K, N), lambda i: (0, 0)),
            pl.BlockSpec((1, N), lambda i: (0, 0)),
            pl.BlockSpec((tm, N), lambda i: (i, 0)),
            pl.BlockSpec((1, N), lambda i: (0, 0)),
            pl.BlockSpec((1, N), lambda i: (0, 0)),
        ],
        out_specs=pl.BlockSpec((tm, N), lambda i: (i, 0)),
        compiler_params=_compiler_params(),
    )(x, w, b, res, g, lb)
    return out[:m0] if pad else out


def _ln_kernel(x_ref, g_ref, b_ref, o_ref, *, eps):
    x = x_ref[...]
    mu = jnp.mean(x, axis=-1, keepdims=True)
    var = jnp.mean(jnp.square(x - mu), axis=-1, keepdims=True)
    o_ref[...] = (x - mu) * lax.rsqrt(var + eps) * g_ref[...] + b_ref[...]


def layernorm(x, g, b, eps=1e-12):
    """x: (M, H) f32, g/b: (1, H) f32."""
    m0, H = x.shape
    x, pad = _pad_rows(x)
    M = x.shape[0]
    tm = _row_tile(M)
    out = pl.pallas_call(
        functools.partial(_ln_kernel, eps=eps),
        out_shape=jax.ShapeDtypeStruct((M, H), jnp.float32),
        grid=(M // tm,),
        in_specs=[
            pl.BlockSpec((tm, H), lambda i: (i, 0)),
            pl.BlockSpec((1, H), lambda i: (0, 0)),
            pl.BlockSpec((1, H), lambda i: (0, 0)),
        ],
        out_specs=pl.BlockSpec((tm, H), lambda i: (i, 0)),
        compiler_params=_compiler_params(),
    )(x, g, b)
    return out[:m0] if pad else out


def _attn_kernel(qkv_ref, m_ref, o_ref, *, num_heads, head_dim, scale):
    """One batch element per grid step; all heads handled inside the kernel.

    qkv_ref block: (1, S, 3H) fused projection; m_ref: (1, 1, S) additive mask;
    o_ref: (1, S, H).  Head split/merge is done via lane slices in-kernel, so
    no JAX-level transposes are needed between pallas_calls.
    """
    qkv = qkv_ref[0]                      # (S, 3H) f32
    mask = m_ref[0]                       # (1, S)  additive (-1e9 at pads)
    H = num_heads * head_dim
    for h in range(num_heads):            # static loop; single grid step / batch
        lo = h * head_dim
        q = qkv[:, lo:lo + head_dim].astype(jnp.bfloat16)
        k = qkv[:, H + lo:H + lo + head_dim].astype(jnp.bfloat16)
        v = qkv[:, 2 * H + lo:2 * H + lo + head_dim].astype(jnp.bfloat16)
        # scores = q @ k^T (contract last dims; no explicit transpose)
        s = lax.dot_general(q, k, (((1,), (1,)), ((), ())),
                            preferred_element_type=jnp.float32)
        s = s * scale + mask
        s_max = jnp.max(s, axis=-1, keepdims=True)
        p = jnp.exp(s - s_max)
        # Fully-masked rows normalize to uniform (matches PyTorch here).
        p = p * pl.reciprocal(jnp.sum(p, axis=-1, keepdims=True), approx=True)
        ctx = jnp.dot(p.astype(jnp.bfloat16), v,
                      preferred_element_type=jnp.float32)     # (S, Dh) f32
        o_ref[0, :, lo:lo + head_dim] = ctx


def mha_attention(qkv, add_mask, num_heads):
    """qkv: (B, S, 3H) f32; add_mask: (B, 1, S) additive -> (B, S, H) f32."""
    B, S, H3 = qkv.shape
    H = H3 // 3
    Dh = H // num_heads
    scale = 1.0 / math.sqrt(Dh)
    return pl.pallas_call(
        functools.partial(_attn_kernel, num_heads=num_heads, head_dim=Dh,
                          scale=scale),
        out_shape=jax.ShapeDtypeStruct((B, S, H), jnp.float32),
        grid=(B,),
        in_specs=[
            pl.BlockSpec((1, S, H3), lambda i: (i, 0, 0)),
            pl.BlockSpec((1, 1, S), lambda i: (i, 0, 0)),
        ],
        out_specs=pl.BlockSpec((1, S, H), lambda i: (i, 0, 0)),
        compiler_params=_compiler_params(),
    )(qkv, add_mask)


def _cosine_loss_kernel(em1_ref, m1_ref, em2_ref, m2_ref, lab_ref,
                        w1_ref, b1_ref, w2_ref, b2_ref,
                        sim_ref, err_ref):
    """One batch element per grid step (parallel grid, keeps both v7x TCs busy)."""
    w1 = w1_ref[...]          # (H, H) bf16
    b1 = b1_ref[...]          # (1, H) f32
    w2 = w2_ref[...]
    b2 = b2_ref[...]

    def attend_and_pool(em, m):
        # SelfAttention: Linear -> ReLU -> Linear, softmax over the sequence
        # axis (torch dim=1), elementwise rescale; then masked mean pooling.
        # em: (S, H) f32; m: (1, S) f32 mask row (lane-dense).
        h = jnp.dot(em.astype(jnp.bfloat16), w1,
                    preferred_element_type=jnp.float32) + b1
        h = jnp.maximum(h, 0.0)
        energy = jnp.dot(h.astype(jnp.bfloat16), w2,
                         preferred_element_type=jnp.float32) + b2      # (S, H)
        emax = jnp.max(energy, axis=0, keepdims=True)
        e = jnp.exp(energy - emax)
        w = e * pl.reciprocal(jnp.sum(e, axis=0, keepdims=True), approx=True)
        weighted = em * w                                              # (S, H)
        # masked sum over seq as a (1,S) @ (S,H) matmul (MXU, lane-dense)
        pooled = jnp.dot(m, weighted, preferred_element_type=jnp.float32)
        denom = jnp.maximum(jnp.sum(m, axis=-1, keepdims=True), 1e-9)  # clamp(min=1e-9)
        return pooled / denom                                          # (1, H)

    u = attend_and_pool(em1_ref[0], m1_ref[0])
    v = attend_and_pool(em2_ref[0], m2_ref[0])

    eps = 1e-8                              # torch.cosine_similarity default eps
    num = jnp.sum(u * v, axis=-1, keepdims=True)       # (1, 1)
    un = jnp.sqrt(jnp.sum(u * u, axis=-1, keepdims=True))
    vn = jnp.sqrt(jnp.sum(v * v, axis=-1, keepdims=True))
    sim = num / (jnp.maximum(un, eps) * jnp.maximum(vn, eps))          # (1, 1)

    sim_ref[0] = sim
    d = sim - lab_ref[0]
    err_ref[0] = d * d


def cosine_loss(cos_params, em1, mask1, em2, mask2, labels):
    B, S1, H = em1.shape
    S2 = em2.shape[1]
    m1 = mask1.astype(jnp.float32).reshape(B, 1, S1)     # lane-dense mask rows
    m2 = mask2.astype(jnp.float32).reshape(B, 1, S2)
    lab = labels.astype(jnp.float32).reshape(B, 1, 1)

    sim, sqerr = pl.pallas_call(
        _cosine_loss_kernel,
        out_shape=(jax.ShapeDtypeStruct((B, 1, 1), jnp.float32),
                   jax.ShapeDtypeStruct((B, 1, 1), jnp.float32)),
        grid=(B,),
        in_specs=[
            pl.BlockSpec((1, S1, H), lambda i: (i, 0, 0)),
            pl.BlockSpec((1, 1, S1), lambda i: (i, 0, 0)),
            pl.BlockSpec((1, S2, H), lambda i: (i, 0, 0)),
            pl.BlockSpec((1, 1, S2), lambda i: (i, 0, 0)),
            pl.BlockSpec((1, 1, 1), lambda i: (i, 0, 0)),
            pl.BlockSpec((H, H), lambda i: (0, 0)),
            pl.BlockSpec((1, H), lambda i: (0, 0)),
            pl.BlockSpec((H, H), lambda i: (0, 0)),
            pl.BlockSpec((1, H), lambda i: (0, 0)),
        ],
        out_specs=(pl.BlockSpec((1, 1, 1), lambda i: (i, 0, 0)),
                   pl.BlockSpec((1, 1, 1), lambda i: (i, 0, 0))),
        compiler_params=_compiler_params(),
    )(em1, m1, em2, m2, lab,
      cos_params["w1"], cos_params["b1"], cos_params["w2"], cos_params["b2"])

    sim = sim.reshape(B)
    # TODO(synk): final MSE is a mean over B scalars; kept in plain JAX
    # (the per-example squared errors are computed in the Pallas kernel).
    loss = jnp.mean(sqerr)
    return sim, loss


# ----------------------------------------------------------------------------
# BERT encoder (embedding gather in JAX, everything else in the kernels above)
# ----------------------------------------------------------------------------
def bert_forward(params, input_ids, token_type_ids, attention_mask, cfg):
    B, S = input_ids.shape
    H = cfg["hidden_size"]
    nH = cfg["num_heads"]

    # TODO(synk): embedding table gather stays in plain JAX (no clean Pallas gather here).
    we = params["word_emb"][input_ids]                     # (B, S, H)
    pe = params["pos_emb"][jnp.arange(S)][None, :, :]      # (1, S, H)
    te = params["type_emb"][token_type_ids]                # (B, S, H)
    x = (we + pe + te).reshape(B * S, H).astype(jnp.float32)
    x = layernorm(x, params["emb_ln_g"], params["emb_ln_b"])

    add_mask = ((1.0 - attention_mask.astype(jnp.float32)) * -1e9).reshape(B, 1, S)

    for lp in params["layers"]:
        # Fused Q/K/V projection: one kernel, (H, 3H) weight, lane-dense output.
        qkv = dense(x, lp["wqkv"], lp["bqkv"])                       # (B*S, 3H)
        ctx = mha_attention(qkv.reshape(B, S, 3 * H), add_mask, nH)  # (B, S, H)
        attn = ctx.reshape(B * S, H)
        # attention output projection + residual + LayerNorm, fused
        x = dense_res_ln(attn, lp["wo"], lp["bo"], x, lp["ln1_g"], lp["ln1_b"])
        # FFN: dense + GELU, then output projection + residual + LayerNorm, fused
        inter = dense(x, lp["wi"], lp["bi"], activation="gelu")
        x = dense_res_ln(inter, lp["wo2"], lp["bo2"], x, lp["ln2_g"], lp["ln2_b"])

    return x.reshape(B, S, H)


def wssbert_forward(params, cfg, input_ids, attention_mask, token_type_ids,
                    padding_length, labels):
    seq_out = bert_forward(params, input_ids, token_type_ids, attention_mask, cfg)
    p = padding_length
    em1 = seq_out[:, :p, :]
    em2 = seq_out[:, p:, :]
    m1 = attention_mask[:, :p]
    m2 = attention_mask[:, p:]
    sim, loss = cosine_loss(params["cos"], em1, m1, em2, m2, labels.reshape(-1))
    preds = (sim > 0.5).astype(jnp.int32)   # torch .long(); int32 under JAX defaults
    return {"loss": loss, "logits": sim, "preds": preds}


# ----------------------------------------------------------------------------
# Deterministic synthetic parameters (matmul weights stored as bf16)
# ----------------------------------------------------------------------------
def init_params(key, cfg):
    H = cfg["hidden_size"]
    I = cfg["intermediate_size"]

    def nrm_bf16(k, shape):
        return (0.02 * jax.random.normal(k, shape)).astype(jnp.bfloat16)

    def nrm_f32(k, shape):
        return (0.02 * jax.random.normal(k, shape)).astype(jnp.float32)

    keys = jax.random.split(key, 8 + cfg["num_layers"])
    params = {
        "word_emb": nrm_f32(keys[0], (cfg["vocab_size"], H)),
        "pos_emb": nrm_f32(keys[1], (cfg["max_position"], H)),
        "type_emb": nrm_f32(keys[2], (cfg["type_vocab_size"], H)),
        "emb_ln_g": jnp.ones((1, H), jnp.float32),
        "emb_ln_b": jnp.zeros((1, H), jnp.float32),
        "cos": {
            "w1": nrm_bf16(keys[3], (H, H)), "b1": jnp.zeros((1, H), jnp.float32),
            "w2": nrm_bf16(keys[4], (H, H)), "b2": jnp.zeros((1, H), jnp.float32),
        },
        "layers": [],
    }
    for li in range(cfg["num_layers"]):
        lk = jax.random.split(keys[8 + li], 4)
        params["layers"].append({
            "wqkv": nrm_bf16(lk[0], (H, 3 * H)),
            "bqkv": jnp.zeros((1, 3 * H), jnp.float32),
            "wo": nrm_bf16(lk[1], (H, H)), "bo": jnp.zeros((1, H), jnp.float32),
            "ln1_g": jnp.ones((1, H), jnp.float32),
            "ln1_b": jnp.zeros((1, H), jnp.float32),
            "wi": nrm_bf16(lk[2], (H, I)), "bi": jnp.zeros((1, I), jnp.float32),
            "wo2": nrm_bf16(lk[3], (I, H)), "bo2": jnp.zeros((1, H), jnp.float32),
            "ln2_g": jnp.ones((1, H), jnp.float32),
            "ln2_b": jnp.zeros((1, H), jnp.float32),
        })
    return params


# ----------------------------------------------------------------------------
if __name__ == "__main__":
    cfg = dict(vocab_size=50, hidden_size=32, num_heads=2, num_layers=2,
               intermediate_size=64, max_position=64, type_vocab_size=2)
    B, S = 2, 16
    padding_length = 8     # sequence is a concatenation of two 8-token segments

    key = jax.random.PRNGKey(0)
    kp, k1, k2, k3 = jax.random.split(key, 4)
    params = init_params(kp, cfg)

    input_ids = jax.random.randint(k1, (B, S), 0, cfg["vocab_size"], dtype=jnp.int32)
    attention_mask = jnp.ones((B, S), dtype=jnp.int32)
    attention_mask = attention_mask.at[0, 6:8].set(0)    # pad inside segment 1
    attention_mask = attention_mask.at[:, 14:16].set(0)  # pad inside segment 2
    token_type_ids = jnp.concatenate(
        [jnp.zeros((B, padding_length), jnp.int32),
         jnp.ones((B, S - padding_length), jnp.int32)], axis=1)
    labels = jax.random.uniform(k3, (B,), dtype=jnp.float32)

    out = wssbert_forward(params, cfg, input_ids, attention_mask,
                          token_type_ids, padding_length, labels)
    jax.block_until_ready(out)

    assert out["loss"].shape == ()
    assert out["logits"].shape == (B,)
    assert out["preds"].shape == (B,)
    print("KERNEL_OK")
</pallas_src>

<mosaic_0001>
module attributes {stable_mosaic.version = 11 : i64} {
  func.func @_ln_kernel(%arg0: i32, %arg1: memref<16x32xf32, #tpu.memory_space<vmem>>, %arg2: memref<1x32xf32, #tpu.memory_space<vmem>>, %arg3: memref<1x32xf32, #tpu.memory_space<vmem>>, %arg4: memref<16x32xf32, #tpu.memory_space<vmem>>) attributes {dimension_semantics = [#tpu.dimension_semantics<parallel>], iteration_bounds = array<i64: 2>, scalar_prefetch = 0 : i64, scratch_operands = 0 : i64, tpu.core_type = #tpu.core_type<tc>, window_params = [{transform_indices = @transform_0, window_bounds = array<i64: 16, 32>}, {pipeline_mode = #tpu.pipeline_mode<synchronous>, transform_indices = @transform_1, window_bounds = array<i64: 1, 32>}, {pipeline_mode = #tpu.pipeline_mode<synchronous>, transform_indices = @transform_2, window_bounds = array<i64: 1, 32>}, {transform_indices = @transform_3, window_bounds = array<i64: 16, 32>}]} {
    %c0 = arith.constant 0 : index
    %c0_0 = arith.constant 0 : index
    %0 = vector.load %arg1[%c0, %c0_0] : memref<16x32xf32, #tpu.memory_space<vmem>>, vector<16x32xf32>
    %cst = arith.constant dense<0.000000e+00> : vector<16xf32>
    %1 = vector.multi_reduction <add>, %0, %cst [1] : vector<16x32xf32> to vector<16xf32>
    %2 = vector.shape_cast %1 : vector<16xf32> to vector<16x1xf32>
    %cst_1 = arith.constant 3.200000e+01 : f32
    %3 = vector.broadcast %cst_1 : f32 to vector<16x1xf32>
    %4 = arith.divf %2, %3 : vector<16x1xf32>
    %5 = vector.broadcast %4 : vector<16x1xf32> to vector<16x32xf32>
    %6 = arith.subf %0, %5 : vector<16x32xf32>
    %7 = arith.mulf %6, %6 : vector<16x32xf32>
    %cst_2 = arith.constant dense<0.000000e+00> : vector<16xf32>
    %8 = vector.multi_reduction <add>, %7, %cst_2 [1] : vector<16x32xf32> to vector<16xf32>
    %9 = vector.shape_cast %8 : vector<16xf32> to vector<16x1xf32>
    %cst_3 = arith.constant 3.200000e+01 : f32
    %10 = vector.broadcast %cst_3 : f32 to vector<16x1xf32>
    %11 = arith.divf %9, %10 : vector<16x1xf32>
    %12 = vector.broadcast %4 : vector<16x1xf32> to vector<16x32xf32>
    %13 = arith.subf %0, %12 : vector<16x32xf32>
    %cst_4 = arith.constant 9.99999996E-13 : f32
    %14 = vector.broadcast %cst_4 : f32 to vector<16x1xf32>
    %15 = arith.addf %11, %14 : vector<16x1xf32>
    %16 = math.rsqrt %15 : vector<16x1xf32>
    %17 = vector.broadcast %16 : vector<16x1xf32> to vector<16x32xf32>
    %18 = arith.mulf %13, %17 : vector<16x32xf32>
    %c0_5 = arith.constant 0 : index
    %c0_6 = arith.constant 0 : index
    %19 = vector.load %arg2[%c0_5, %c0_6] : memref<1x32xf32, #tpu.memory_space<vmem>>, vector<1x32xf32>
    %20 = vector.broadcast %19 : vector<1x32xf32> to vector<16x32xf32>
    %21 = arith.mulf %18, %20 : vector<16x32xf32>
    %c0_7 = arith.constant 0 : index
    %c0_8 = arith.constant 0 : index
    %22 = vector.load %arg3[%c0_7, %c0_8] : memref<1x32xf32, #tpu.memory_space<vmem>>, vector<1x32xf32>
    %23 = vector.broadcast %22 : vector<1x32xf32> to vector<16x32xf32>
    %24 = arith.addf %21, %23 : vector<16x32xf32>
    %c0_9 = arith.constant 0 : index
    %c0_10 = arith.constant 0 : index
    %25 = vector.load %arg4[%c0_9, %c0_10] : memref<16x32xf32, #tpu.memory_space<vmem>>, vector<16x32xf32>
    tpu.vector_store %arg4[%c0_9, %c0_10], %24 {strides = array<i32>} : memref<16x32xf32, #tpu.memory_space<vmem>>, vector<16x32xf32>,
    return
  }
  func.func @transform_0(%arg0: i32) -> (i32, i32) {
    %c0_i32 = arith.constant 0 : i32
    %c0_i32_0 = arith.constant 0 : i32
    return %arg0, %c0_i32 : i32, i32
  }
  func.func @transform_1(%arg0: i32) -> (i32, i32) {
    %c0_i32 = arith.constant 0 : i32
    %c0_i32_0 = arith.constant 0 : i32
    %c0_i32_1 = arith.constant 0 : i32
    return %c0_i32, %c0_i32_0 : i32, i32
  }
  func.func @transform_2(%arg0: i32) -> (i32, i32) {
    %c0_i32 = arith.constant 0 : i32
    %c0_i32_0 = arith.constant 0 : i32
    %c0_i32_1 = arith.constant 0 : i32
    return %c0_i32, %c0_i32_0 : i32, i32
  }
  func.func @transform_3(%arg0: i32) -> (i32, i32) {
    %c0_i32 = arith.constant 0 : i32
    %c0_i32_0 = arith.constant 0 : i32
    return %arg0, %c0_i32 : i32, i32
  }
}

</mosaic_0001>

<bundles_post_ra>
// kernel: tpu_custom_call.1
= control target key start
LH: loop header
LB: loop body
LE: loop exit
PB: predicated region body
PF: predicated region fallthrough
CT: control target
= control target key end

     0   :  { %8 = vsyncpa [#allocation3], 0  ;;  %s702_s0 = inlined_call_operand.hbm [shape: f32[32,32], index: 0, kind: input, shape index: {}]   ;;  %s703_s1 = inlined_call_operand.vmem [shape: f32[1,32], index: 1, kind: input, shape index: {}]   ;;  %s704_s2 = inlined_call_operand.vmem [shape: f32[1,32], index: 2, kind: input, shape index: {}]   ;;  %s705_s3 = inlined_call_operand.hbm [shape: f32[32,32], index: 3, kind: output, shape index: {}]  }
   0x1   :  { %10 = vsyncpa [#allocation3 + $0x1], 0 }
   0x2   :  { %11 = vsyncpa [#allocation4], 0 }
   0x3   :  { %13 = vsyncpa [#allocation4 + $0x1], 0  ;;  %s524_s12 = smov 0   ;;  %s526_s13 = smov 0  }
   0x4   :  { %s528_s14 = smov 0   ;;  %s530_s15 = smov 0  }
   0x5 LB: > { %s545_s16 = sadd.s32 4294967295, %s496_s15   ;;  %s328_s17 = sadd.s32 4294967294, %s496_s15   ;;  %s496_s15 = sphi %s530_s15, %s718_s15   ;;  %s492_s14 = sphi %s528_s14, %s717_s14   ;;  %s488_s13 = sphi %s526_s13, %s716_s13   ;;  %s484_s12 = sphi %s524_s12, %s715_s12  }
   0x6   : > { %s549_s18 = sadd.s32 1, %s496_s15   ;;  %s26_s19 = sadd.s32 1, %s492_s14 }
   0x7   : > { %s23_s20 = ssub.s32 %s496_s15, %s549_s18  ;;  %p33_p0 = scmp.ne.s32.totalorder %s492_s14, %s488_s13 }
   0x8   : > { %p24_p1 = scmp.eq.s32.totalorder %s23_s20, 0  ;;  %p34_p2 = scmp.eq.s32.totalorder %s496_s15, 0 }
   0x9   : > { %p39_p3 = scmp.ne.s32.totalorder %s488_s13, %s484_s12  ;;  %p40_p4 = scmp.eq.s32.totalorder %s545_s16, 0 }
   0xa   : > { %s561_s21 = scalar_select %p24_p1, %s492_s14, %s26_s19  }
   0xb   : > { %p563_p5 = por %p34_p2, %p33_p0  ;;  %p567_p6 = por %p40_p4, %p39_p3 }
   0xc   : > { %p105_p7 = scmp.eq.s32.totalorder %s545_s16, 1  ;;  %p111_p8 = scmp.eq.s32.totalorder %s328_s17, 1 }
   0xd   : > { %p358_p10 = scmp.lt.s32.totalorder %s496_s15, 2  ;;  %s137_s26 = sand.u32 1, %s492_s14  }
   0xe   : > { %p574_p11 = por %p105_p7, %p33_p0  ;;  %p578_p12 = por %p111_p8, %p39_p3 }
   0xf   : > { %s344_s27 = sshll.u32 %s496_s15, 8  ;;  %s331_s28 = sshll.u32 %s137_s26, 4 }
  0x10   : > { %s709_s24 = scalar_select %p574_p11, 1, 0 }
  0x11   : > { %s710_s25 = scalar_select %p578_p12, 1, 0 }
  0x12   : > { %s587_s4 = scalar_lea.hbm %s702_s0, %s344_s27  ;;  %s141_s5 = scalar_lea.vmem [#allocation2], %s331_s28 }
  0x13   : > { %s148_s6 = sshll.u32 %s141_s5, 4  ;;  %p591_p13 = pnand %p358_p10, %p563_p5  ;;  %s595_s6 = int_to_ptr.vmem [resolvable:$true] %s148_s6 }
  0x14   : > { %s597_s8 = scalar_lea.sflag [#allocation3], %s137_s26  ;;  %s400_s9 = scalar_lea.hbm %s587_s4, 256 }
  0x15   : > { %p401_p0 = scmp.ne.s32.totalorder %s587_s4, %s400_s9  ;;  %p402_p1 = pneg %p591_p13 }
  0x16   : > { %s405_s17 = scalar_lea.hbm %s702_s0, 512  ;;  %p406_p4 = scmp.lt.u32.totalorder %s587_s4, %s702_s0 }
  0x17   : > { %p403_p2 = pnand %p402_p1, %p401_p0  ;;  %p407_p5 = scmp.lt.u32.totalorder %s405_s17, %s400_s9 }
  0x18   : > { %p409_p8 = scmp.lt.u32.totalorder %s400_s9, %s587_s4 }
  0x19   : > { %p404_p3 = pneg %p403_p2  ;;  %p408_p7 = por %p407_p5, %p406_p4 }
  0x1b   : > { %p410_p10 = por %p409_p8, %p408_p7 }
  0x1d   : > { %p411_p9 = pnand %p410_p10, %p404_p3 }
  0x1f   : > { %414 = shalt.err (!%p411_p9)
}
  0x20   : > { %s415_s22 = scalar_lea.vmem %s595_s6, 256  ;;  %s498_s26 = smov [#allocation2]  }
  0x21   : > { %p416_p0 = scmp.ne.s32.totalorder %s595_s6, %s415_s22  ;;  %s420_s27 = sshll.u32 %s498_s26, 4  ;;  %s421_s27 = int_to_ptr.vmem [resolvable:$false] %s420_s27 }
  0x22   : > { %s422_s28 = scalar_lea.vmem %s421_s27, 512  ;;  %p423_p11 = scmp.lt.s32.totalorder %s595_s6, %s421_s27 }
  0x23   : > { %p418_p2 = pnand %p416_p0, %p402_p1  ;;  %p424_p4 = scmp.lt.s32.totalorder %s422_s28, %s415_s22 }
  0x25   : > { %p419_p12 = pneg %p418_p2  ;;  %p425_p5 = por %p424_p4, %p423_p11 }
  0x27   : > { %p426_p7 = pnand %p425_p5, %p419_p12 }
  0x29   : > { %429 = shalt.err (!%p426_p7)
}
  0x2a   : > { %s499_s29 = smov 128   ;;  %s500_s30 = smov 8  }
  0x2b   : > { %353 = dma.hbm_to_vmem [thread:$0]  (!%p591_p13), %s587_s4, 256, %s595_s6, %s597_s8, %s499_s29, %s499_s29, %s500_s30  }
  0x2c   : > { %p334_p9 = scmp.ge.s32.totalorder %s496_s15, 1  ;;  %p156_p1 = scmp.lt.s32.totalorder %s496_s15, 3 }
  0x2e   : > { %p157_p3 = pnand %p334_p9, %p156_p1 }
  0x2f   : > { %s628_s5 = sand.u32 (!%p157_p3), 1, %s488_s13  }
  0x30   : > { %160 = sbr.rel (%p157_p3) target bundleno = 389 (0x185), region = 32  ;;  %s335_s9 = sshll.u32 (!%p157_p3), %s628_s5, 4 }
  0x31   : > { %s163_s10 = scalar_lea.sflag (!%p157_p3), [#allocation3], %s628_s5  ;;  %s166_s11 = scalar_lea.vmem (!%p157_p3), [#allocation2], %s335_s9 }
  0x37   : > { %475 = dma.done.wait (%p567_p6), %s163_s10, 256  }
  0x38   : > { %477 = vsyncadd (%p567_p6), %s163_s10, 4294967040  ;;  %vm193_vm0 = vcmask 261120   ;;  %v191_v0 = vld [vmem:[%s166_s11] sm:$0xff]  ;;  %v192_v1 = vld [vmem:[%s166_s11 + $0x8] sm:$0xff]  ;;  %s345_s8 = sshll.u32 %s545_s16, 8  ;;  %s188_s17 = scalar_lea.vmem [#allocation5], %s335_s9 }
  0x39   : > { %v194_v2 = vsel %vm193_vm0, %v191_v0, 0.0  ;;  %v197_v3 = vsel %vm193_vm0, %v192_v1, 0.0  ;;  %v337_v21 = vld [vmem:[%s703_s1] ss:$0 sm:$0xff]  ;;  %s255_s19 = sshll.u32 %s188_s17, 4  ;;  %s655_s26 = scalar_lea.hbm %s705_s3, %s345_s8  ;;  %s657_s19 = int_to_ptr.vmem [resolvable:$true] %s255_s19 }
  0x3a   : > { %195 = vadd.xlane.f32.xlu0 %v194_v2  ;;  %v338_v23 = vld [vmem:[%s704_s2] ss:$0 sm:$0xff]  ;;  %s242_s16 = scalar_lea.sflag [#allocation4], %s628_s5  ;;  %s430_s27 = scalar_lea.vmem %s657_s19, 256 }
  0x3b   : > { %p431_p6 = scmp.ne.s32.totalorder %s657_s19, %s430_s27  ;;  %p712_p11 = scmp.ne.s32.totalorder %s709_s24, 0 }
  0x3c   : > { %s501_s28 = smov [#allocation5]  }
  0x3d   : > { %p432_p12 = pnand %p431_p6, %p712_p11  ;;  %s434_s29 = sshll.u32 %s501_s28, 4  ;;  %s435_s29 = int_to_ptr.vmem [resolvable:$false] %s434_s29 }
  0x3e   : > { %198 = vadd.xlane.f32.xlu0 %v197_v3  ;;  %s436_s30 = scalar_lea.vmem %s435_s29, 512  ;;  %p437_p8 = scmp.lt.s32.totalorder %s657_s19, %s435_s29 }
  0x3f   : > { %p433_p13 = pneg %p432_p12  ;;  %p438_p10 = scmp.lt.s32.totalorder %s436_s30, %s430_s27 }
  0x41   : > { %p439_p0 = por %p438_p10, %p437_p8 }
  0x43   : > { %p440_p2 = pnand %p439_p0, %p433_p13 }
  0xc7   : > { %v196_v4 = vpop.xlane.xlu0 %195 }
  0xc8   : > { %v201_v5 = vmul.f32 0.03125, %v196_v4 }
  0xca   : > { %v203_v6 = vsub.f32 %v191_v0, %v201_v5 }
  0xcb   : > { %v199_v7 = vpop.xlane.xlu0 %198 }
  0xcc   : > { %v202_v8 = vmul.f32 0.03125, %v199_v7  ;;  %v205_v9 = vmul.f32 %v203_v6, %v203_v6 }
  0xce   : > { %v204_v10 = vsub.f32 %v192_v1, %v202_v8  ;;  %v207_v11 = vsel %vm193_vm0, %v205_v9, 0.0 }
  0xcf   : > { %208 = vadd.xlane.f32.xlu1 %v207_v11 }
  0xd0   : > { %v206_v12 = vmul.f32 %v204_v10, %v204_v10 }
  0xd2   : > { %v210_v13 = vsel %vm193_vm0, %v206_v12, 0.0 }
  0xd3   : > { %211 = vadd.xlane.f32.xlu1 %v210_v13 }
 0x15c   : > { %v209_v14 = vpop.xlane.xlu1 %208 }
 0x15d   : > { %v213_v15 = vmul.f32 0.03125, %v209_v14 }
 0x15f   : > { %v215_v16 = vadd.f32 1e-12, %v213_v15 }
 0x160   : > { %v212_v17 = vpop.xlane.xlu1 %211 }
 0x161   : > { %396 = vrsqrt.f32 %v215_v16  ;;  %v214_v18 = vmul.f32 0.03125, %v212_v17 }
 0x163   : > { %v216_v19 = vadd.f32 1e-12, %v214_v18 }
 0x165   : > { %398 = vrsqrt.f32 %v216_v19 }
 0x16b   : > { %v397_v20 = vpop.eup %396 }
 0x16c   : > { %v219_v22 = vmul.f32 %v397_v20, %v203_v6 }
 0x16e   : > { %v228_v24 = vmul.f32 %v337_v21, %v219_v22 }
 0x16f   : > { %v399_v25 = vpop.eup %398 }
 0x170   : > { %v237_v26 = vadd.f32 %v338_v23, %v228_v24  ;;  %v220_v27 = vmul.f32 %v399_v25, %v204_v10 }
 0x172   : > { %v229_v28 = vmul.f32 %v337_v21, %v220_v27  ;;  %239 = vst.msk [vmem:[%s188_s17] sm:$0xff] %vm193_vm0, %v237_v26 }
 0x174   : > { %v238_v29 = vadd.f32 %v338_v23, %v229_v28 }
 0x176   : > { %240 = vst.msk [vmem:[%s188_s17 + $0x8] sm:$0xff] %vm193_vm0, %v238_v29 }
 0x177   : > { %443 = shalt.err (!%p440_p2)
}
 0x178   : > { %s444_s9 = scalar_lea.hbm %s655_s26, 256  ;;  %s448_s23 = scalar_lea.hbm %s705_s3, 512 }
 0x179   : > { %p445_p4 = scmp.ne.s32.totalorder %s655_s26, %s444_s9  ;;  %p449_p9 = scmp.lt.u32.totalorder %s655_s26, %s705_s3 }
 0x17a   : > { %p450_p1 = scmp.lt.u32.totalorder %s448_s23, %s444_s9  ;;  %p452_p6 = scmp.lt.u32.totalorder %s444_s9, %s655_s26 }
 0x17b   : > { %p446_p5 = pnand %p445_p4, %p712_p11 }
 0x17c   : > { %p451_p3 = por %p450_p1, %p449_p9 }
 0x17d   : > { %p447_p7 = pneg %p446_p5 }
 0x17e   : > { %p453_p12 = por %p452_p6, %p451_p3 }
 0x180   : > { %p454_p13 = pnand %p453_p12, %p447_p7 }
 0x182   : > { %457 = shalt.err (!%p454_p13)
}
 0x183   : > { %s502_s7 = smov 128   ;;  %s503_s8 = smov 8  }
 0x184   : > { %348 = dma.vmem_to_hbm [thread:$0]  (%p712_p11), %s657_s19, 256, %s655_s26, %s242_s16, %s502_s7, %s502_s7, %s503_s8  }
 0x185 PF: > { %s270_s17 = sand.u32 1, %s484_s12   ;;  %p713_p8 = scmp.ne.s32.totalorder %s710_s25, 0 }
 0x186   : > { %p714_p10 = scmp.ge.s32.totalorder %s496_s15, 2  ;;  %s271_s20 = scalar_lea.sflag [#allocation4], %s270_s17 }
 0x188   : > { %p355_p0 = pnand %p714_p10, %p713_p8 }
 0x18a   : > { %479 = dma.done.wait (!%p355_p0), %s271_s20, 256  }
 0x18b   : > { %481 = vsyncadd (!%p355_p0), %s271_s20, 4294967040  ;;  %p16_p2 = scmp.ge.s32.totalorder %s549_s18, 4   ;;  %s715_s12 = smov %s488_s13 }
 0x18c   : > { %s716_s13 = smov %s492_s14  ;;  %s717_s14 = smov %s561_s21 }
 0x18d   : > { %s718_s15 = smov %s549_s18  ;;  %18 = sbr.rel (!%p16_p2) target bundleno = 5 (0x5), region = 77 }
 0x194   :  { %276 = vsyncpa [#allocation3], 1 }
 0x195   :  { %278 = vsyncpa [#allocation3 + $0x1], 1 }
 0x196   :  { %279 = vsyncpa [#allocation4], 1 }
 0x197   :  { %281 = vsyncpa [#allocation4 + $0x1], 1 }

</bundles_post_ra>
